<compile_context>
chip_gen: v7x
topology: tpu7x:2x2x1
jax: 0.10.0
libtpu: 0.0.40
codegen_flags: <defaults>
</compile_context>

<pallas_src>
import functools

import jax
import jax.numpy as jnp
from jax.experimental import pallas as pl
from jax.experimental.pallas import tpu as pltpu


def _toroidal_conv_kernel(x_ref, w_ref, b_ref, o_ref, *, taps, width):
    """One batch element: out = sum_t W_t @ circular_shift_t(x) + b.

    x_ref: (1, C_in, M)     bf16, M = H*W flattened on the lane axis
    w_ref: (T, C_out, C_in) bf16, T = KH*KW per-tap weight matrices
    b_ref: (C_out, 1)       f32
    o_ref: (1, C_out, M)    f32 (lane-dense)
    taps:  static ((dh, dw), ...) toroidal offsets, ordered like w_ref
    width: static W (row length inside the flattened spatial axis)
    """
    x = x_ref[0]                                     # (C_in, M) bf16
    c_in, m = x.shape

    # Doubled copy: x2[:, s : s + m] == circular left-shift of x by s.
    # One lane-aligned concat; every tap below is then a static lane window.
    x2 = jnp.concatenate([x, x], axis=-1)            # (C_in, 2M) bf16

    # Within-row column index, hoisted out of the tap loop (VPU iota + mod).
    col = jax.lax.broadcasted_iota(jnp.int32, (c_in, m), 1) % width

    acc = None
    for t, (dh, dw) in enumerate(taps):
        s = dh * width + dw                          # flat circular shift (static)
        a = x2[:, (s % m):(s % m) + m]               # exact except at row edges
        if dw > 0:
            b = x2[:, ((s - width) % m):((s - width) % m) + m]
            tap = jnp.where(col >= width - dw, b, a)  # fix wrap within the row
        elif dw < 0:
            b = x2[:, ((s + width) % m):((s + width) % m) + m]
            tap = jnp.where(col < -dw, b, a)
        else:
            tap = a                                  # pure row shift is exact
        part = jax.lax.dot_general(                  # (C_out, M) f32 on the MXU
            w_ref[t], tap,
            dimension_numbers=(((1,), (0,)), ((), ())),
            preferred_element_type=jnp.float32,
        )
        acc = part if acc is None else acc + part

    o_ref[0] = (acc + b_ref[...]).astype(o_ref.dtype)   # f32 bias add, f32 out


def toroidal_conv2d(x_nchw, weight, bias, padding=1):
    """ToroidalConv2d forward: circular (wrap) padding followed by Conv2d.

    x_nchw: (N, C_in, H, W)       float32
    weight: (C_out, C_in, KH, KW) float32 (PyTorch Conv2d layout)
    bias:   (C_out,)              float32
    Implements the canonical 'same-size' configuration: stride 1, dilation 1,
    conv padding 0, 2*padding == KH-1 == KW-1 (e.g. 3x3 conv with padding=1).
    """
    N, C_in, H, W = x_nchw.shape
    C_out, C_in_w, KH, KW = weight.shape
    assert C_in == C_in_w and bias.shape == (C_out,)
    # TODO(synk): general (non-'same') conv geometries (stride/dilation/even
    # kernels) are not covered by the roll-based in-kernel im2col path.
    assert 2 * padding == KH - 1 and 2 * padding == KW - 1, "only 'same' toroidal conv"
    # Match PyTorch's circular-pad constraint (wrap width must fit one period).
    assert 0 <= padding < H and padding < W

    M = H * W
    T = KH * KW

    # Single bf16 cast of the un-amplified input; reshape is metadata-only.
    x_flat = x_nchw.astype(jnp.bfloat16).reshape(N, C_in, M)
    # Per-tap (C_out, C_in) weight matrices, tap order (kh, kw) = kernel loop order.
    w_taps = jnp.transpose(weight, (2, 3, 0, 1)).reshape(T, C_out, C_in).astype(jnp.bfloat16)
    b2d = bias.reshape(C_out, 1).astype(jnp.float32)

    taps = tuple((kh - padding, kw - padding) for kh in range(KH) for kw in range(KW))

    # --- Per-step VMEM budget (with layout padding), checked against the
    # smallest generation budgets and used to set an explicit limit w/ headroom.
    def _pad(v, q):
        return -(-v // q) * q
    mp = _pad(M, 128)
    ci_p, co_p = _pad(C_in, 16), _pad(C_out, 8)
    est = (2 * ci_p * mp * 2                                   # x block, double-buffered (bf16)
           + 2 * co_p * mp * 4                                 # out block, double-buffered (f32)
           + T * _pad(C_out, 16) * _pad(C_in, 128) * 2         # resident weights (bf16)
           + _pad(C_out, 8) * 128 * 4                          # resident bias (f32)
           + 8 * ci_p * mp * 2                                 # x2 + tap/select temporaries (bf16)
           + 2 * co_p * mp * 4)                                # f32 accumulator temporaries
    # TODO(synk): spatial tiling with halo shifts for images too large to keep
    # one (C_in, H*W) block plus temporaries in VMEM.
    assert est <= 24 * 2**20, f"per-step VMEM estimate too large: {est} bytes"
    vmem_limit = int(min(max(4 * est, 8 * 2**20), 32 * 2**20))

    kernel = functools.partial(_toroidal_conv_kernel, taps=taps, width=W)

    out = pl.pallas_call(
        kernel,
        out_shape=jax.ShapeDtypeStruct((N, C_out, M), x_nchw.dtype),
        grid_spec=pltpu.PrefetchScalarGridSpec(
            num_scalar_prefetch=0,
            grid=(N,),                                          # batch on the parallel axis
            in_specs=[
                pl.BlockSpec((1, C_in, M), lambda n: (n, 0, 0)),      # image (lane-dense)
                pl.BlockSpec((T, C_out, C_in), lambda n: (0, 0, 0)),  # weights: resident
                pl.BlockSpec((C_out, 1), lambda n: (0, 0)),           # bias:   resident
            ],
            out_specs=pl.BlockSpec((1, C_out, M), lambda n: (n, 0, 0)),
        ),
        compiler_params=pltpu.CompilerParams(
            dimension_semantics=("parallel",),
            vmem_limit_bytes=vmem_limit,
        ),
    )(x_flat, w_taps, b2d)

    return out.reshape(N, C_out, H, W)


def _reference(x_nchw, weight, bias, padding=1):
    # Pure-JAX reference: wrap-pad then VALID conv, NCHW/OIHW like PyTorch.
    p = padding
    x = jnp.concatenate([x_nchw[:, :, -p:], x_nchw, x_nchw[:, :, :p]], axis=2)
    x = jnp.concatenate([x[:, :, :, -p:], x, x[:, :, :, :p]], axis=3)
    out = jax.lax.conv_general_dilated(
        x, weight, window_strides=(1, 1), padding="VALID",
        dimension_numbers=("NCHW", "OIHW", "NCHW"),
    )
    return out + bias.reshape(1, -1, 1, 1)


if __name__ == "__main__":
    key = jax.random.PRNGKey(0)
    k_x, k_w, k_b = jax.random.split(key, 3)

    N, C_in, H, W = 2, 4, 16, 16
    C_out, KH, KW = 8, 3, 3
    padding = 1

    x = jax.random.normal(k_x, (N, C_in, H, W), dtype=jnp.float32)
    weight = jax.random.normal(k_w, (C_out, C_in, KH, KW), dtype=jnp.float32) * 0.1
    bias = jax.random.normal(k_b, (C_out,), dtype=jnp.float32) * 0.1

    out = jax.block_until_ready(toroidal_conv2d(x, weight, bias, padding=padding))
    ref = jax.block_until_ready(_reference(x, weight, bias, padding=padding))

    assert out.shape == ref.shape == (N, C_out, H, W)
    # bf16 MXU operands with f32 accumulation: tolerance covers operand rounding.
    assert jnp.allclose(out, ref, rtol=2e-2, atol=2e-2), float(jnp.max(jnp.abs(out - ref)))

    print("KERNEL_OK")
</pallas_src>

<mosaic_0001>
module attributes {stable_mosaic.version = 11 : i64} {
  func.func @_toroidal_conv_kernel(%arg0: i32, %arg1: memref<1x4x256xbf16, #tpu.memory_space<vmem>>, %arg2: memref<9x8x4xbf16, #tpu.memory_space<vmem>>, %arg3: memref<8x1xf32, #tpu.memory_space<vmem>>, %arg4: memref<1x8x256xf32, #tpu.memory_space<vmem>>) attributes {dimension_semantics = [#tpu.dimension_semantics<parallel>], iteration_bounds = array<i64: 2>, scalar_prefetch = 0 : i64, scratch_operands = 0 : i64, tpu.core_type = #tpu.core_type<tc>, window_params = [{transform_indices = @transform_0, window_bounds = array<i64: 1, 4, 256>}, {pipeline_mode = #tpu.pipeline_mode<synchronous>, transform_indices = @transform_1, window_bounds = array<i64: 9, 8, 4>}, {pipeline_mode = #tpu.pipeline_mode<synchronous>, transform_indices = @transform_2, window_bounds = array<i64: 8, 1>}, {transform_indices = @transform_3, window_bounds = array<i64: 1, 8, 256>}]} {
    %c0 = arith.constant 0 : index
    %c0_0 = arith.constant 0 : index
    %c0_1 = arith.constant 0 : index
    %0 = vector.load %arg1[%c0, %c0_0, %c0_1] : memref<1x4x256xbf16, #tpu.memory_space<vmem>>, vector<1x4x256xbf16>
    %1 = vector.shape_cast %0 : vector<1x4x256xbf16> to vector<4x256xbf16>
    %2 = tpu.concatenate %1, %1 in 1 : vector<4x256xbf16>, vector<4x256xbf16> -> vector<4x512xbf16>
    %3 = tpu.iota {dimensions = array<i32: 1>} : vector<4x256xi32>
    %c16_i32 = arith.constant 16 : i32
    %c0_i32 = arith.constant 0 : i32
    %4 = arith.cmpi eq, %c16_i32, %c0_i32 : i32
    %c1_i32 = arith.constant 1 : i32
    %5 = arith.select %4, %c1_i32, %c16_i32 : i32
    %6 = vector.broadcast %5 : i32 to vector<4x256xi32>
    %7 = arith.remsi %3, %6 : vector<4x256xi32>
    %c0_i32_2 = arith.constant 0 : i32
    %8 = vector.broadcast %c0_i32_2 : i32 to vector<4x256xi32>
    %9 = arith.cmpi ne, %7, %8 : vector<4x256xi32>
    %c0_i32_3 = arith.constant 0 : i32
    %10 = vector.broadcast %c0_i32_3 : i32 to vector<4x256xi32>
    %11 = arith.cmpi slt, %7, %10 : vector<4x256xi32>
    %c0_i32_4 = arith.constant 0 : i32
    %12 = arith.cmpi slt, %5, %c0_i32_4 : i32
    %13 = vector.broadcast %12 : i1 to vector<4x256xi1>
    %14 = vector.broadcast %13 : vector<4x256xi1> to vector<4x256xi1>
    %15 = arith.xori %11, %14 : vector<4x256xi1>
    %16 = arith.andi %15, %9 : vector<4x256xi1>
    %17 = vector.broadcast %5 : i32 to vector<4x256xi32>
    %18 = arith.addi %7, %17 : vector<4x256xi32>
    %19 = arith.select %16, %18, %7 : vector<4x256xi1>, vector<4x256xi32>
    %20 = vector.extract_strided_slice %2 {offsets = [0, 239], sizes = [4, 256], strides = [1, 1]} : vector<4x512xbf16> to vector<4x256xbf16>
    %21 = vector.extract_strided_slice %2 {offsets = [0, 255], sizes = [4, 256], strides = [1, 1]} : vector<4x512xbf16> to vector<4x256xbf16>
    %c1_i32_5 = arith.constant 1 : i32
    %22 = vector.broadcast %c1_i32_5 : i32 to vector<4x256xi32>
    %23 = arith.cmpi slt, %19, %22 : vector<4x256xi32>
    %24 = arith.select %23, %21, %20 : vector<4x256xi1>, vector<4x256xbf16>
    %c0_6 = arith.constant 0 : index
    %c0_7 = arith.constant 0 : index
    %c0_8 = arith.constant 0 : index
    %25 = vector.load %arg2[%c0_6, %c0_7, %c0_8] : memref<9x8x4xbf16, #tpu.memory_space<vmem>>, vector<1x8x4xbf16>
    %26 = vector.shape_cast %25 : vector<1x8x4xbf16> to vector<8x4xbf16>
    %cst = arith.constant dense<0.000000e+00> : vector<8x256xf32>
    %27 = tpu.matmul %26, %24, %cst {dimension_numbers = #tpu.dot_dimension_numbers<[1], [0], [0], [1], [0, 0, 1, 1], [], []>} : vector<8x4xbf16>, vector<4x256xbf16>, vector<8x256xf32> -> vector<8x256xf32>
    %28 = vector.extract_strided_slice %2 {offsets = [0, 240], sizes = [4, 256], strides = [1, 1]} : vector<4x512xbf16> to vector<4x256xbf16>
    %c1 = arith.constant 1 : index
    %c0_9 = arith.constant 0 : index
    %c0_10 = arith.constant 0 : index
    %29 = vector.load %arg2[%c1, %c0_9, %c0_10] : memref<9x8x4xbf16, #tpu.memory_space<vmem>>, vector<1x8x4xbf16>
    %30 = vector.shape_cast %29 : vector<1x8x4xbf16> to vector<8x4xbf16>
    %cst_11 = arith.constant dense<0.000000e+00> : vector<8x256xf32>
    %31 = tpu.matmul %30, %28, %cst_11 {dimension_numbers = #tpu.dot_dimension_numbers<[1], [0], [0], [1], [0, 0, 1, 1], [], []>} : vector<8x4xbf16>, vector<4x256xbf16>, vector<8x256xf32> -> vector<8x256xf32>
    %32 = arith.addf %27, %31 : vector<8x256xf32>
    %33 = vector.extract_strided_slice %2 {offsets = [0, 241], sizes = [4, 256], strides = [1, 1]} : vector<4x512xbf16> to vector<4x256xbf16>
    %34 = vector.extract_strided_slice %2 {offsets = [0, 225], sizes = [4, 256], strides = [1, 1]} : vector<4x512xbf16> to vector<4x256xbf16>
    %c15_i32 = arith.constant 15 : i32
    %35 = vector.broadcast %c15_i32 : i32 to vector<4x256xi32>
    %36 = arith.cmpi sge, %19, %35 : vector<4x256xi32>
    %37 = arith.select %36, %34, %33 : vector<4x256xi1>, vector<4x256xbf16>
    %c2 = arith.constant 2 : index
    %c0_12 = arith.constant 0 : index
    %c0_13 = arith.constant 0 : index
    %38 = vector.load %arg2[%c2, %c0_12, %c0_13] : memref<9x8x4xbf16, #tpu.memory_space<vmem>>, vector<1x8x4xbf16>
    %39 = vector.shape_cast %38 : vector<1x8x4xbf16> to vector<8x4xbf16>
    %cst_14 = arith.constant dense<0.000000e+00> : vector<8x256xf32>
    %40 = tpu.matmul %39, %37, %cst_14 {dimension_numbers = #tpu.dot_dimension_numbers<[1], [0], [0], [1], [0, 0, 1, 1], [], []>} : vector<8x4xbf16>, vector<4x256xbf16>, vector<8x256xf32> -> vector<8x256xf32>
    %41 = arith.addf %32, %40 : vector<8x256xf32>
    %42 = vector.extract_strided_slice %2 {offsets = [0, 255], sizes = [4, 256], strides = [1, 1]} : vector<4x512xbf16> to vector<4x256xbf16>
    %43 = vector.extract_strided_slice %2 {offsets = [0, 15], sizes = [4, 256], strides = [1, 1]} : vector<4x512xbf16> to vector<4x256xbf16>
    %c1_i32_15 = arith.constant 1 : i32
    %44 = vector.broadcast %c1_i32_15 : i32 to vector<4x256xi32>
    %45 = arith.cmpi slt, %19, %44 : vector<4x256xi32>
    %46 = arith.select %45, %43, %42 : vector<4x256xi1>, vector<4x256xbf16>
    %c3 = arith.constant 3 : index
    %c0_16 = arith.constant 0 : index
    %c0_17 = arith.constant 0 : index
    %47 = vector.load %arg2[%c3, %c0_16, %c0_17] : memref<9x8x4xbf16, #tpu.memory_space<vmem>>, vector<1x8x4xbf16>
    %48 = vector.shape_cast %47 : vector<1x8x4xbf16> to vector<8x4xbf16>
    %cst_18 = arith.constant dense<0.000000e+00> : vector<8x256xf32>
    %49 = tpu.matmul %48, %46, %cst_18 {dimension_numbers = #tpu.dot_dimension_numbers<[1], [0], [0], [1], [0, 0, 1, 1], [], []>} : vector<8x4xbf16>, vector<4x256xbf16>, vector<8x256xf32> -> vector<8x256xf32>
    %50 = arith.addf %41, %49 : vector<8x256xf32>
    %51 = vector.extract_strided_slice %2 {offsets = [0, 0], sizes = [4, 256], strides = [1, 1]} : vector<4x512xbf16> to vector<4x256xbf16>
    %c4 = arith.constant 4 : index
    %c0_19 = arith.constant 0 : index
    %c0_20 = arith.constant 0 : index
    %52 = vector.load %arg2[%c4, %c0_19, %c0_20] : memref<9x8x4xbf16, #tpu.memory_space<vmem>>, vector<1x8x4xbf16>
    %53 = vector.shape_cast %52 : vector<1x8x4xbf16> to vector<8x4xbf16>
    %cst_21 = arith.constant dense<0.000000e+00> : vector<8x256xf32>
    %54 = tpu.matmul %53, %51, %cst_21 {dimension_numbers = #tpu.dot_dimension_numbers<[1], [0], [0], [1], [0, 0, 1, 1], [], []>} : vector<8x4xbf16>, vector<4x256xbf16>, vector<8x256xf32> -> vector<8x256xf32>
    %55 = arith.addf %50, %54 : vector<8x256xf32>
    %56 = vector.extract_strided_slice %2 {offsets = [0, 1], sizes = [4, 256], strides = [1, 1]} : vector<4x512xbf16> to vector<4x256xbf16>
    %57 = vector.extract_strided_slice %2 {offsets = [0, 241], sizes = [4, 256], strides = [1, 1]} : vector<4x512xbf16> to vector<4x256xbf16>
    %c15_i32_22 = arith.constant 15 : i32
    %58 = vector.broadcast %c15_i32_22 : i32 to vector<4x256xi32>
    %59 = arith.cmpi sge, %19, %58 : vector<4x256xi32>
    %60 = arith.select %59, %57, %56 : vector<4x256xi1>, vector<4x256xbf16>
    %c5 = arith.constant 5 : index
    %c0_23 = arith.constant 0 : index
    %c0_24 = arith.constant 0 : index
    %61 = vector.load %arg2[%c5, %c0_23, %c0_24] : memref<9x8x4xbf16, #tpu.memory_space<vmem>>, vector<1x8x4xbf16>
    %62 = vector.shape_cast %61 : vector<1x8x4xbf16> to vector<8x4xbf16>
    %cst_25 = arith.constant dense<0.000000e+00> : vector<8x256xf32>
    %63 = tpu.matmul %62, %60, %cst_25 {dimension_numbers = #tpu.dot_dimension_numbers<[1], [0], [0], [1], [0, 0, 1, 1], [], []>} : vector<8x4xbf16>, vector<4x256xbf16>, vector<8x256xf32> -> vector<8x256xf32>
    %64 = arith.addf %55, %63 : vector<8x256xf32>
    %65 = vector.extract_strided_slice %2 {offsets = [0, 15], sizes = [4, 256], strides = [1, 1]} : vector<4x512xbf16> to vector<4x256xbf16>
    %66 = vector.extract_strided_slice %2 {offsets = [0, 31], sizes = [4, 256], strides = [1, 1]} : vector<4x512xbf16> to vector<4x256xbf16>
    %c1_i32_26 = arith.constant 1 : i32
    %67 = vector.broadcast %c1_i32_26 : i32 to vector<4x256xi32>
    %68 = arith.cmpi slt, %19, %67 : vector<4x256xi32>
    %69 = arith.select %68, %66, %65 : vector<4x256xi1>, vector<4x256xbf16>
    %c6 = arith.constant 6 : index
    %c0_27 = arith.constant 0 : index
    %c0_28 = arith.constant 0 : index
    %70 = vector.load %arg2[%c6, %c0_27, %c0_28] : memref<9x8x4xbf16, #tpu.memory_space<vmem>>, vector<1x8x4xbf16>
    %71 = vector.shape_cast %70 : vector<1x8x4xbf16> to vector<8x4xbf16>
    %cst_29 = arith.constant dense<0.000000e+00> : vector<8x256xf32>
    %72 = tpu.matmul %71, %69, %cst_29 {dimension_numbers = #tpu.dot_dimension_numbers<[1], [0], [0], [1], [0, 0, 1, 1], [], []>} : vector<8x4xbf16>, vector<4x256xbf16>, vector<8x256xf32> -> vector<8x256xf32>
    %73 = arith.addf %64, %72 : vector<8x256xf32>
    %74 = vector.extract_strided_slice %2 {offsets = [0, 16], sizes = [4, 256], strides = [1, 1]} : vector<4x512xbf16> to vector<4x256xbf16>
    %c7 = arith.constant 7 : index
    %c0_30 = arith.constant 0 : index
    %c0_31 = arith.constant 0 : index
    %75 = vector.load %arg2[%c7, %c0_30, %c0_31] : memref<9x8x4xbf16, #tpu.memory_space<vmem>>, vector<1x8x4xbf16>
    %76 = vector.shape_cast %75 : vector<1x8x4xbf16> to vector<8x4xbf16>
    %cst_32 = arith.constant dense<0.000000e+00> : vector<8x256xf32>
    %77 = tpu.matmul %76, %74, %cst_32 {dimension_numbers = #tpu.dot_dimension_numbers<[1], [0], [0], [1], [0, 0, 1, 1], [], []>} : vector<8x4xbf16>, vector<4x256xbf16>, vector<8x256xf32> -> vector<8x256xf32>
    %78 = arith.addf %73, %77 : vector<8x256xf32>
    %79 = vector.extract_strided_slice %2 {offsets = [0, 17], sizes = [4, 256], strides = [1, 1]} : vector<4x512xbf16> to vector<4x256xbf16>
    %80 = vector.extract_strided_slice %2 {offsets = [0, 1], sizes = [4, 256], strides = [1, 1]} : vector<4x512xbf16> to vector<4x256xbf16>
    %c15_i32_33 = arith.constant 15 : i32
    %81 = vector.broadcast %c15_i32_33 : i32 to vector<4x256xi32>
    %82 = arith.cmpi sge, %19, %81 : vector<4x256xi32>
    %83 = arith.select %82, %80, %79 : vector<4x256xi1>, vector<4x256xbf16>
    %c8 = arith.constant 8 : index
    %c0_34 = arith.constant 0 : index
    %c0_35 = arith.constant 0 : index
    %84 = vector.load %arg2[%c8, %c0_34, %c0_35] : memref<9x8x4xbf16, #tpu.memory_space<vmem>>, vector<1x8x4xbf16>
    %85 = vector.shape_cast %84 : vector<1x8x4xbf16> to vector<8x4xbf16>
    %cst_36 = arith.constant dense<0.000000e+00> : vector<8x256xf32>
    %86 = tpu.matmul %85, %83, %cst_36 {dimension_numbers = #tpu.dot_dimension_numbers<[1], [0], [0], [1], [0, 0, 1, 1], [], []>} : vector<8x4xbf16>, vector<4x256xbf16>, vector<8x256xf32> -> vector<8x256xf32>
    %87 = arith.addf %78, %86 : vector<8x256xf32>
    %c0_37 = arith.constant 0 : index
    %c0_38 = arith.constant 0 : index
    %88 = vector.load %arg3[%c0_37, %c0_38] : memref<8x1xf32, #tpu.memory_space<vmem>>, vector<8x1xf32>
    %89 = vector.broadcast %88 : vector<8x1xf32> to vector<8x256xf32>
    %90 = arith.addf %87, %89 : vector<8x256xf32>
    %c0_39 = arith.constant 0 : index
    %c0_40 = arith.constant 0 : index
    %c0_41 = arith.constant 0 : index
    %91 = vector.load %arg4[%c0_39, %c0_40, %c0_41] : memref<1x8x256xf32, #tpu.memory_space<vmem>>, vector<1x8x256xf32>
    %92 = vector.shape_cast %91 : vector<1x8x256xf32> to vector<8x256xf32>
    %93 = vector.shape_cast %90 : vector<8x256xf32> to vector<1x8x256xf32>
    tpu.vector_store %arg4[%c0_39, %c0_40, %c0_41], %93 {strides = array<i32>} : memref<1x8x256xf32, #tpu.memory_space<vmem>>, vector<1x8x256xf32>,
    return
  }
  func.func @transform_0(%arg0: i32) -> (i32, i32, i32) {
    %c0_i32 = arith.constant 0 : i32
    %c0_i32_0 = arith.constant 0 : i32
    %c0_i32_1 = arith.constant 0 : i32
    return %arg0, %c0_i32, %c0_i32_0 : i32, i32, i32
  }
  func.func @transform_1(%arg0: i32) -> (i32, i32, i32) {
    %c0_i32 = arith.constant 0 : i32
    %c0_i32_0 = arith.constant 0 : i32
    %c0_i32_1 = arith.constant 0 : i32
    %c0_i32_2 = arith.constant 0 : i32
    return %c0_i32, %c0_i32_0, %c0_i32_1 : i32, i32, i32
  }
  func.func @transform_2(%arg0: i32) -> (i32, i32) {
    %c0_i32 = arith.constant 0 : i32
    %c0_i32_0 = arith.constant 0 : i32
    %c0_i32_1 = arith.constant 0 : i32
    return %c0_i32, %c0_i32_0 : i32, i32
  }
  func.func @transform_3(%arg0: i32) -> (i32, i32, i32) {
    %c0_i32 = arith.constant 0 : i32
    %c0_i32_0 = arith.constant 0 : i32
    %c0_i32_1 = arith.constant 0 : i32
    return %arg0, %c0_i32, %c0_i32_0 : i32, i32, i32
  }
}

</mosaic_0001>

<bundles_post_ra>
// kernel: tpu_custom_call.1
= control target key start
LH: loop header
LB: loop body
LE: loop exit
PB: predicated region body
PF: predicated region fallthrough
CT: control target
= control target key end

     0   :  { %8 = vsyncpa [#allocation3], 0  ;;  %s1430_s0 = inlined_call_operand.vmem [shape: bf16[2,4,256], index: 0, kind: input, shape index: {}]   ;;  %s1431_s1 = inlined_call_operand.vmem [shape: bf16[9,8,4], index: 1, kind: input, shape index: {}]   ;;  %s1432_s2 = inlined_call_operand.vmem [shape: f32[8,1], index: 2, kind: input, shape index: {}]   ;;  %s1433_s3 = inlined_call_operand.hbm [shape: f32[2,8,256], index: 3, kind: output, shape index: {}]  }
   0x1   :  { %10 = vsyncpa [#allocation3 + $0x1], 0  ;;  %s1146_s12 = smov 0   ;;  %s1148_s13 = smov 0  }
   0x2   :  { %s1150_s14 = smov 0   ;;  %s1152_s15 = smov 0  }
   0x3 LB: > { %s1167_s16 = sadd.s32 4294967295, %s1114_s15   ;;  %s962_s17 = sadd.s32 4294967294, %s1114_s15   ;;  %s1114_s15 = sphi %s1152_s15, %s1439_s15   ;;  %s1110_s14 = sphi %s1150_s14, %s1438_s14   ;;  %s1106_s13 = sphi %s1148_s13, %s1437_s13   ;;  %s1102_s12 = sphi %s1146_s12, %s1436_s12  }
   0x4   : > { %s1171_s18 = sadd.s32 1, %s1114_s15   ;;  %s91_s19 = sadd.s32 1, %s1110_s14 }
   0x5   : > { %s88_s20 = ssub.s32 %s1114_s15, %s1171_s18  ;;  %p101_p0 = scmp.ne.s32.totalorder %s1110_s14, %s1106_s13 }
   0x6   : > { %p89_p1 = scmp.eq.s32.totalorder %s88_s20, 0  ;;  %p102_p2 = scmp.eq.s32.totalorder %s1167_s16, 1 }
   0x7   : > { %p107_p3 = scmp.ne.s32.totalorder %s1106_s13, %s1102_s12  ;;  %p108_p4 = scmp.eq.s32.totalorder %s962_s17, 1 }
   0x8   : > { %s1182_s21 = scalar_select %p89_p1, %s1110_s14, %s91_s19  }
   0x9   : > { %p1184_p5 = por %p102_p2, %p101_p0  ;;  %p1188_p6 = por %p108_p4, %p107_p3 }
   0xa   : > { %p965_p7 = scmp.ge.s32.totalorder %s1114_s15, 1  ;;  %p140_p8 = scmp.lt.s32.totalorder %s1114_s15, 3 }
   0xc   : > { %p141_p9 = pnand %p965_p7, %p140_p8 }
   0xd   : > { %p164_p10 = scmp.lt.s32.totalorder (!%p141_p9), %s1167_s16, 1  ;;  %v184_v0 = vlaneseq (!%p141_p9)  ;;  %v1116_v1 = vmov (!%p141_p9), 0   ;;  %s1117_s29 = smov (!%p141_p9), 16   ;;  %vm236_vm6 = vcmask (!%p141_p9), 130048   ;;  %vm252_vm7 = vcmask (!%p141_p9), 1041408   ;;  %v878_v62 = vld [vmem:[%s1432_s2] sm:$0xff] (!%p141_p9) }
   0xe   : > { %144 = sbr.rel (%p141_p9) target bundleno = 538 (0x21a), region = 32  ;;  %291 = vmatprep.mubr.bf16.mxu0 (!%p141_p9), %v1116_v1  ;;  %353 = vmatprep.mubr.bf16.mxu1 (!%p141_p9), %v1116_v1  ;;  %s1118_s30 = smov (!%p141_p9), 127   ;;  %v970_v24 = vld [vmem:[%s1431_s1 + $0x4] sm:$0xf] (!%p141_p9)  ;;  %vm248_vm9 = vcmask (!%p141_p9), 31744   ;;  %vm227_vm11 = vcmask (!%p141_p9), 1039360  }
   0xf   : > { %v185_v2 = vand.u32 (!%p141_p9), 127, %v184_v0  ;;  %1051 = vset.pattern.permute.xlu0 (!%p141_p9), %v1116_v1  ;;  %v216_v3 = vshrl.u32 (!%p141_p9), %v184_v0, 7  ;;  %s1119_s4 = smov (!%p141_p9), 97   ;;  %s1120_s5 = smov (!%p141_p9), 112   ;;  %vm387_vm12 = vcmask (!%p141_p9), 916480   ;;  %vm378_vm15 = vcmask (!%p141_p9), 793600  }
  0x10   : > { %s1121_s6 = smov (!%p141_p9), 15   ;;  %s1122_s7 = smov (!%p141_p9), 113  }
  0x11   : > { %v186_v4 = vadd.s32 (!%p141_p9), 128, %v185_v2  ;;  %v191_v5 = vand.u32 (!%p141_p9), 15, %v185_v2  ;;  %v217_v9 = vsub.s32 (!%p141_p9), 0, %v216_v3  ;;  %v221_v10 = vsub.s32 (!%p141_p9), 4, %v216_v3  ;;  %s1123_s8 = smov (!%p141_p9), 31   ;;  %s1124_s9 = smov (!%p141_p9), 1  }
  0x12   : > { %s161_s17 = sand.u32 (!%p141_p9), 1, %s1106_s13   ;;  %s1002_s20 = sshll.u32 (!%p141_p9), %s1167_s16, 8 }
  0x13   : > { %v198_v7 = vand.u32 (!%p141_p9), 15, %v186_v4  ;;  %vm211_vm0 = vcmp.lt.s32.totalorder (!%p141_p9), %v191_v5, 1  ;;  %vm362_vm1 = vcmp.ge.s32.totalorder (!%p141_p9), %v191_v5, 15  ;;  %s966_s19 = sshll.u32 (!%p141_p9), %s161_s17, 4 }
  0x15   : > { %s165_s24 = scalar_select %p164_p10, %s1167_s16, 1  ;;  %vm212_vm2 = vcmp.lt.s32.totalorder %v198_v7, 1  ;;  %vm363_vm3 = vcmp.ge.s32.totalorder %v198_v7, 15 }
  0x16   : > { %vm213_vm4 = vmpackc.low %vm212_vm2, %vm211_vm0  ;;  %vm466_vm0 = vcmask 121856   ;;  %s889_s16 = scalar_lea.sflag [#allocation3], %s161_s17 }
  0x17   : > { %s1001_s25 = sshll.u32 %s165_s24, 2  ;;  %v214_v11 = vsel %vm213_vm4, 65537, %v1116_v1  ;;  %vm364_vm5 = vmpackc.low %vm363_vm3, %vm362_vm1  ;;  %s163_s24 = scalar_lea.vmem [#allocation2], %s966_s19 }
  0x18   : > { %s168_s28 = scalar_lea.vmem %s1430_s0, %s1001_s25  ;;  %v218_v12 = vrot.slane %v214_v11, %v217_v9  ;;  %v365_v13 = vsel %vm364_vm5, 65537, %v1116_v1  ;;  %v222_v15 = vrot.slane %v214_v11, %v221_v10  ;;  %v245_v11 = vld [vmem:[%s1431_s1] sm:$0xf]  ;;  %s903_s25 = sshll.u32 %s163_s24, 4  ;;  %s1390_s25 = int_to_ptr.vmem [resolvable:$true] %s903_s25 }
  0x19   : > { %v1202_v6 = vld.sshfl [vmem:[%s168_s28] sm:$0x33 pattern:$0x76325410]  ;;  %v373_v14 = vrot.slane %v365_v13, %v221_v10  ;;  %v369_v16 = vrot.slane %v365_v13, %v217_v9  ;;  %s1388_s28 = scalar_lea.hbm %s1433_s3, %s1002_s20 }
  0x1a   : > { %234 = vrot.lane.b32.xlu1 %v1202_v6, %s1117_s29  ;;  %v1207_v8 = vcombine.high %v1202_v6, %v1202_v6  ;;  %223 = vrot.lane.b32.xlu0 %v218_v12, %s1118_s30 }
  0x1e   : > { %232 = vrot.lane.b32.xlu1 %v1207_v8, %s1117_s29  ;;  %225 = vrot.lane.b32.xlu0 %v222_v15, %s1118_s30  ;;  %s1052_s29 = scalar_lea.vmem %s1390_s25, 256 }
  0x1f   : > { %p1053_p11 = scmp.ne.s32.totalorder %s1390_s25, %s1052_s29 }
  0x21   : > { %p1054_p12 = pnand %p1053_p11, %p1184_p5 }
  0x22   : > { %376 = vrot.lane.b32.xlu1 %v373_v14, %s1119_s4  ;;  %374 = vrot.lane.b32.xlu0 %v369_v16, %s1119_s4 }
  0x23   : > { %p1055_p13 = pneg %p1054_p12 }
  0x26   : > { %385 = vrot.lane.b32.xlu1 %v1202_v6, %s1120_s5  ;;  %383 = vrot.lane.b32.xlu0 %v1207_v8, %s1120_s5 }
  0x2a   : > { %464 = vrot.lane.b32.xlu1 %v222_v15, %s1121_s6  ;;  %462 = vrot.lane.b32.xlu0 %v218_v12, %s1121_s6 }
  0x2e   : > { %596 = vrot.lane.b32.xlu1 %v373_v14, %s1122_s7  ;;  %594 = vrot.lane.b32.xlu0 %v369_v16, %s1122_s7 }
  0x32   : > { %673 = vrot.lane.b32.xlu1 %v222_v15, %s1123_s8  ;;  %671 = vrot.lane.b32.xlu0 %v218_v12, %s1123_s8 }
  0x36   : > { %804 = vrot.lane.b32.xlu1 %v373_v14, %s1124_s9  ;;  %802 = vrot.lane.b32.xlu0 %v369_v16, %s1124_s9 }
  0x8c   : > { %v1226_v17 = vpop.permute.xlu1 %234  ;;  %v224_v21 = vpop.permute.xlu0 %223 }
  0x8d   : > { %vm229_vm8 = vcmp.ne.s16.totalorder %v224_v21, 0 }
  0x90   : > { %v233_v18 = vpop.permute.xlu1 %232  ;;  %v226_v25 = vpop.permute.xlu0 %225 }
  0x91   : > { %v1229_v19 = vsel %vm236_vm6, %v1226_v17, %v233_v18  ;;  %v1232_v20 = vsel %vm236_vm6, %v233_v18, %v1226_v17  ;;  %v242_v23 = vsel %vm229_vm8, %v1207_v8, %v233_v18  ;;  %vm231_vm10 = vcmp.ne.s16.totalorder %v226_v25, 0 }
  0x92   : > { %971 = vmatprep.subr.msk.bf16.mxu0 %vm252_vm7, %v1229_v19  ;;  %v254_v22 = vsel %vm252_vm7, %v1232_v20, 0  ;;  %303 = vrot.lane.b32.xlu0 %v242_v23, %s1124_s9  ;;  %v244_v27 = vsel %vm231_vm10, %v1207_v8, %v1229_v19  ;;  %v228_v30 = vsel %vm227_vm11, %v224_v21, %v226_v25  ;;  %vm485_vm6 = vcmask 924672  }
  0x93   : > { %260 = vmatpush1.bf16.msra.mxu0 %v254_v22  ;;  %vm230_vm14 = vcmp.ne.s16.totalorder %v228_v30, 0 }
  0x94   : > { %v377_v26 = vpop.permute.xlu1 %376  ;;  %v375_v28 = vpop.permute.xlu0 %374  ;;  %v243_v38 = vsel %vm230_vm14, %v1202_v6, %v1232_v20 }
  0x95   : > { %vm380_vm13 = vcmp.ne.s16.totalorder %v375_v28, 0  ;;  %v379_v36 = vsel %vm378_vm15, %v375_v28, %v377_v26  ;;  %vm382_vm2 = vcmp.ne.s16.totalorder %v377_v26, 0 }
  0x96   : > { %972 = vmatmul.mubr.msk.bf16.vlgmr.msra.gmra.mrb[0].mxu0 %vm248_vm9, %v970_v24  ;;  %307 = vrot.lane.b32.xlu0 %v244_v27, %s1124_s9  ;;  %vm381_vm3 = vcmp.ne.s16.totalorder %v379_v36, 0  ;;  %v978_v24 = vld [vmem:[%s1431_s1 + $0xc] sm:$0xf] }
  0x97   : > { %451 = vmatprep.mubr.bf16.mxu0 %v1116_v1 }
  0x98   : > { %v1248_v29 = vpop.permute.xlu1 %385  ;;  %v384_v31 = vpop.permute.xlu0 %383 }
  0x99   : > { %v1253_v32 = vsel %vm387_vm12, %v384_v31, %v1248_v29  ;;  %v1265_v39 = vsel %vm387_vm12, %v1248_v29, %v384_v31  ;;  %v395_v43 = vsel %vm382_vm2, %v1207_v8, %v384_v31  ;;  %vm407_vm12 = vcmask 252928   ;;  %v984_v31 = vld [vmem:[%s1431_s1 + $0x14] sm:$0xf] }
  0x9a   : > { %v393_v33 = vsel %vm380_vm13, %v1207_v8, %v1253_v32  ;;  %v394_v42 = vsel %vm381_vm3, %v1202_v6, %v1265_v39 }
  0x9b   : > { %401 = vrot.lane.b32.xlu1 %v393_v33, %s1123_s8 }
  0x9c   : > { %v463_v34 = vpop.permute.xlu0 %462  ;;  %v465_v35 = vpop.permute.xlu1 %464 }
  0x9d   : > { %vm468_vm1 = vcmp.ne.s16.totalorder %v463_v34, 0  ;;  %v467_v40 = vsel %vm466_vm0, %v463_v34, %v465_v35  ;;  %vm470_vm4 = vcmp.ne.s16.totalorder %v465_v35, 0 }
  0x9e   : > { %v471_v37 = vsel %vm468_vm1, %v1202_v6, %v1232_v20  ;;  %vm469_vm5 = vcmp.ne.s16.totalorder %v467_v40, 0  ;;  %v473_v46 = vsel %vm470_vm4, %v1202_v6, %v233_v18  ;;  %vm309_vm1 = vcmask 7168  }
  0x9f   : > { %479 = vrot.lane.b32.xlu0 %v471_v37, %s1122_s7  ;;  %305 = vrot.lane.b32.xlu1 %v243_v38, %s1124_s9  ;;  %v472_v47 = vsel %vm469_vm5, %v1207_v8, %v1229_v19  ;;  %v754_v38 = vsel %vm252_vm7, %v1265_v39, 0 }
  0xa0   : > { %v595_v41 = vpop.permute.xlu0 %594  ;;  %v597_v44 = vpop.permute.xlu1 %596 }
  0xa1   : > { %vm599_vm8 = vcmp.ne.s16.totalorder %v595_v41, 0  ;;  %v598_v48 = vsel %vm485_vm6, %v595_v41, %v597_v44  ;;  %vm601_vm13 = vcmp.ne.s16.totalorder %v597_v44, 0 }
  0xa2   : > { %v603_v51 = vsel %vm599_vm8, %v1207_v8, %v1248_v29  ;;  %vm600_vm14 = vcmp.ne.s16.totalorder %v598_v48, 0  ;;  %v605_v54 = vsel %vm601_vm13, %v1207_v8, %v1253_v32 }
  0xa3   : > { %403 = vrot.lane.b32.xlu0 %v394_v42, %s1123_s8  ;;  %405 = vrot.lane.b32.xlu1 %v395_v43, %s1123_s8  ;;  %v604_v55 = vsel %vm600_vm14, %v1202_v6, %v1265_v39  ;;  %v990_v43 = vld [vmem:[%s1431_s1 + $0x1c] sm:$0xf] }
  0xa4   : > { %v672_v45 = vpop.permute.xlu0 %671  ;;  %v674_v49 = vpop.permute.xlu1 %673 }
  0xa5   : > { %vm676_vm10 = vcmp.ne.s16.totalorder %v672_v45, 0  ;;  %v675_v52 = vsel %vm407_vm12, %v672_v45, %v674_v49  ;;  %vm678_vm2 = vcmp.ne.s16.totalorder %v674_v49, 0 }
  0xa6   : > { %v680_v50 = vsel %vm676_vm10, %v1202_v6, %v1226_v17  ;;  %vm677_vm3 = vcmp.ne.s16.totalorder %v675_v52, 0  ;;  %v682_v58 = vsel %vm678_vm2, %v1202_v6, %v1232_v20  ;;  %v975_v17 = vld [vmem:[%s1431_s1 + $0x8] sm:$0xf]  ;;  %v546_v20 = vsel %vm252_vm7, %v1202_v6, 0 }
  0xa7   : > { %483 = vrot.lane.b32.xlu0 %v473_v46, %s1122_s7  ;;  %481 = vrot.lane.b32.xlu1 %v472_v47, %s1122_s7  ;;  %v681_v59 = vsel %vm677_vm3, %v1207_v8, %v1229_v19  ;;  %v993_v46 = vld [vmem:[%s1431_s1 + $0x20] sm:$0xf] }
  0xa8   : > { %v803_v53 = vpop.permute.xlu0 %802  ;;  %v805_v56 = vpop.permute.xlu1 %804 }
  0xa9   : > { %v806_v57 = vsel %vm309_vm1, %v803_v53, %v805_v56  ;;  %vm807_vm4 = vcmp.ne.s16.totalorder %v803_v53, 0  ;;  %vm809_vm8 = vcmp.ne.s16.totalorder %v805_v56, 0 }
  0xaa   : > { %vm808_vm5 = vcmp.ne.s16.totalorder %v806_v57, 0  ;;  %v810_v60 = vsel %vm807_vm4, %v1202_v6, %v1265_v39  ;;  %v812_v63 = vsel %vm809_vm8, %v1202_v6, %v1248_v29  ;;  %v981_v6 = vld [vmem:[%s1431_s1 + $0x10] sm:$0xf] }
  0xab   : > { %688 = vrot.lane.b32.xlu0 %v680_v50, %s1119_s4  ;;  %611 = vrot.lane.b32.xlu1 %v603_v51, %s1121_s6  ;;  %v811_v61 = vsel %vm808_vm5, %v1207_v8, %v1253_v32 }
  0xaf   : > { %615 = vrot.lane.b32.xlu1 %v605_v54, %s1121_s6  ;;  %613 = vrot.lane.b32.xlu0 %v604_v55, %s1121_s6 }
  0xb3   : > { %692 = vrot.lane.b32.xlu0 %v682_v58, %s1119_s4  ;;  %690 = vrot.lane.b32.xlu1 %v681_v59, %s1119_s4 }
  0xb7   : > { %818 = vrot.lane.b32.xlu1 %v810_v60, %s1118_s30  ;;  %820 = vrot.lane.b32.xlu0 %v811_v61, %s1118_s30 }
  0xbb   : > { %822 = vrot.lane.b32.xlu1 %v812_v63, %s1118_s30  ;;  %881 = vperm.xlu0 %1051, %v878_v62   ;;  %s1125_s30 = smov [#allocation2]  }
  0xbc   : > { %s1056_s4 = sshll.u32 %s1125_s30, 4  ;;  %s1057_s4 = int_to_ptr.vmem [resolvable:$false] %s1056_s4 }
  0xbd   : > { %s1058_s5 = scalar_lea.vmem %s1057_s4, 512  ;;  %p1059_p0 = scmp.lt.s32.totalorder %s1390_s25, %s1057_s4 }
  0xbe   : > { %p1060_p1 = scmp.lt.s32.totalorder %s1058_s5, %s1052_s29 }
  0xc0   : > { %p1061_p2 = por %p1060_p1, %p1059_p0 }
  0xc2   : > { %p1062_p3 = pnand %p1061_p2, %p1055_p13 }
 0x104   : > { %v304_v0 = vpop.permute.xlu0 %303 }
 0x108   : > { %v308_v2 = vpop.permute.xlu0 %307 }
 0x10d   : > { %v402_v3 = vpop.permute.xlu1 %401 }
 0x111   : > { %v480_v4 = vpop.permute.xlu0 %479  ;;  %v306_v5 = vpop.permute.xlu1 %305 }
 0x112   : > { %v311_v7 = vsel %vm309_vm1, %v306_v5, %v308_v2  ;;  %v310_v9 = vsel %vm309_vm1, %v304_v0, %v306_v5 }
 0x113   : > { %973 = vmatprep.subr.msk.bf16.mxu1 %vm252_vm7, %v311_v7  ;;  %v316_v10 = vsel %vm252_vm7, %v310_v9, 0 }
 0x114   : > { %322 = vmatpush1.bf16.msra.mxu1 %v316_v10 }
 0x115   : > { %v404_v12 = vpop.permute.xlu0 %403  ;;  %v406_v13 = vpop.permute.xlu1 %405 }
 0x116   : > { %v408_v14 = vsel %vm407_vm12, %v402_v3, %v404_v12  ;;  %v409_v15 = vsel %vm407_vm12, %v404_v12, %v406_v13 }
 0x117   : > { %v414_v16 = vsel %vm252_vm7, %v408_v14, 0  ;;  %974 = vmatmul.mubr.msk.bf16.vlgmr.msra.gmra.mrb[0].mxu1 %vm248_vm9, %v245_v11  ;;  %976 = vmatprep.subr.msk.bf16.mxu0 %vm252_vm7, %v409_v15 }
 0x118   : > { %420 = vmatpush1.bf16.msra.mxu0 %v414_v16  ;;  %529 = vmatprep.mubr.bf16.mxu1 %v1116_v1 }
 0x119   : > { %v484_v18 = vpop.permute.xlu0 %483  ;;  %v482_v19 = vpop.permute.xlu1 %481  ;;  %982 = vmatprep.subr.msk.bf16.mxu0 %vm252_vm7, %v1207_v8 }
 0x11a   : > { %v486_v21 = vsel %vm485_vm6, %v480_v4, %v482_v19  ;;  %v487_v22 = vsel %vm485_vm6, %v482_v19, %v484_v18 }
 0x11b   : > { %v492_v23 = vsel %vm252_vm7, %v486_v21, 0  ;;  %977 = vmatmul.mubr.msk.bf16.vlgmr.msra.gmra.mrb[4].mxu0 %vm248_vm9, %v975_v17  ;;  %979 = vmatprep.subr.msk.bf16.mxu1 %vm252_vm7, %v487_v22 }
 0x11c   : > { %498 = vmatpush1.bf16.msra.mxu1 %v492_v23  ;;  %552 = vmatpush1.bf16.msra.mxu0 %v546_v20 }
 0x11d   : > { %v689_v8 = vpop.permute.xlu0 %688  ;;  %v612_v25 = vpop.permute.xlu1 %611  ;;  %583 = vmatprep.mubr.bf16.mxu0 %v1116_v1 }
 0x11f   : > { %980 = vmatmul.mubr.msk.bf16.vlgmr.msra.gmra.mrb[4].mxu1 %vm248_vm9, %v978_v24 }
 0x120   : > { %660 = vmatprep.mubr.bf16.mxu1 %v1116_v1 }
 0x121   : > { %v614_v26 = vpop.permute.xlu0 %613  ;;  %v616_v27 = vpop.permute.xlu1 %615 }
 0x122   : > { %v617_v28 = vsel %vm466_vm0, %v612_v25, %v614_v26  ;;  %v618_v29 = vsel %vm466_vm0, %v614_v26, %v616_v27 }
 0x123   : > { %v623_v30 = vsel %vm252_vm7, %v617_v28, 0  ;;  %983 = vmatmul.mubr.msk.bf16.vlgmr.msra.gmra.mrb[8].mxu0 %vm248_vm9, %v981_v6  ;;  %985 = vmatprep.subr.msk.bf16.mxu1 %vm252_vm7, %v618_v29 }
 0x124   : > { %629 = vmatpush1.bf16.msra.mxu1 %v623_v30  ;;  %737 = vmatprep.mubr.bf16.mxu0 %v1116_v1 }
 0x125   : > { %v693_v33 = vpop.permute.xlu0 %692  ;;  %991 = vmatprep.subr.msk.bf16.mxu1 %vm252_vm7, %v1253_v32  ;;  %v691_v34 = vpop.permute.xlu1 %690  ;;  %v987_v32 = vld [vmem:[%s1431_s1 + $0x18] sm:$0xf] }
 0x126   : > { %v694_v35 = vsel %vm378_vm15, %v689_v8, %v691_v34  ;;  %v695_v36 = vsel %vm378_vm15, %v691_v34, %v693_v33 }
 0x127   : > { %v700_v37 = vsel %vm252_vm7, %v694_v35, 0  ;;  %986 = vmatmul.mubr.msk.bf16.vlgmr.msra.gmra.mrb[8].mxu1 %vm248_vm9, %v984_v31  ;;  %988 = vmatprep.subr.msk.bf16.mxu0 %vm252_vm7, %v695_v36 }
 0x128   : > { %706 = vmatpush1.bf16.msra.mxu0 %v700_v37  ;;  %760 = vmatpush1.bf16.msra.mxu1 %v754_v38 }
 0x129   : > { %v821_v40 = vpop.permute.xlu0 %820  ;;  %v819_v41 = vpop.permute.xlu1 %818  ;;  %791 = vmatprep.mubr.bf16.mxu1 %v1116_v1 }
 0x12a   : > { %v824_v42 = vsel %vm227_vm11, %v819_v41, %v821_v40 }
 0x12b   : > { %989 = vmatmul.mubr.msk.bf16.vlgmr.msra.gmra.mrb[12].mxu0 %vm248_vm9, %v987_v32  ;;  %v830_v45 = vsel %vm252_vm7, %v824_v42, 0 }
 0x12c   : > { %867 = vmatprep.mubr.bf16.mxu0 %v1116_v1 }
 0x12d   : > { %v823_v39 = vpop.permute.xlu1 %822 }
 0x12e   : > { %v825_v44 = vsel %vm227_vm11, %v821_v40, %v823_v39 }
 0x12f   : > { %992 = vmatmul.mubr.msk.bf16.vlgmr.msra.gmra.mrb[12].mxu1 %vm248_vm9, %v990_v43  ;;  %994 = vmatprep.subr.msk.bf16.mxu0 %vm252_vm7, %v825_v44 }
 0x130   : > { %836 = vmatpush1.bf16.msra.mxu0 %v830_v45 }
 0x133   : > { %995 = vmatmul.mubr.msk.bf16.vlgmr.msra.gmra.mrb[16].mxu0 %vm248_vm9, %v993_v46 }
 0x13a   : > { %v882_v30 = vpop.permute.xlu0 %881 }
 0x169   : > { %v293_v47 = vpop.f32.mrb[0].mxu0 }
 0x16a   : > { %v295_v48 = vpop.f32.mrb[1].mxu0 }
 0x16b   : > { %v297_v49 = vpop.f32.mrb[2].mxu0 }
 0x16c   : > { %v298_v1 = vpop.f32.mrb[3].mxu0 }
 0x1ea   : > { %v355_v50 = vpop.f32.mrb[0].mxu1 }
 0x1eb   : > { %v356_v51 = vadd.f32 %v355_v50, %v293_v47  ;;  %v357_v52 = vpop.f32.mrb[1].mxu1 }
 0x1ec   : > { %v358_v53 = vadd.f32 %v357_v52, %v295_v48  ;;  %v359_v54 = vpop.f32.mrb[2].mxu1 }
 0x1ed   : > { %v360_v55 = vpop.f32.mrb[3].mxu1 }
 0x1ee   : > { %v453_v56 = vpop.f32.mrb[4].mxu0 }
 0x1ef   : > { %v460_v57 = vadd.f32 %v453_v56, %v356_v51  ;;  %v455_v58 = vpop.f32.mrb[5].mxu0 }
 0x1f0   : > { %v461_v59 = vadd.f32 %v455_v58, %v358_v53  ;;  %v457_v60 = vpop.f32.mrb[6].mxu0 }
 0x1f1   : > { %v458_v61 = vpop.f32.mrb[7].mxu0 }
 0x1f2   : > { %v531_v62 = vpop.f32.mrb[4].mxu1 }
 0x1f3   : > { %v538_v63 = vadd.f32 %v531_v62, %v460_v57  ;;  %v533_v0 = vpop.f32.mrb[5].mxu1 }
 0x1f4   : > { %v539_v2 = vadd.f32 %v533_v0, %v461_v59  ;;  %v535_v3 = vpop.f32.mrb[6].mxu1 }
 0x1f5   : > { %v536_v4 = vpop.f32.mrb[7].mxu1 }
 0x1f6   : > { %v585_v5 = vpop.f32.mrb[8].mxu0 }
 0x1f7   : > { %v592_v7 = vadd.f32 %v585_v5, %v538_v63  ;;  %v587_v9 = vpop.f32.mrb[9].mxu0 }
 0x1f8   : > { %v593_v10 = vadd.f32 %v587_v9, %v539_v2  ;;  %v589_v11 = vpop.f32.mrb[10].mxu0 }
 0x1f9   : > { %v590_v12 = vpop.f32.mrb[11].mxu0 }
 0x1fa   : > { %v662_v13 = vpop.f32.mrb[8].mxu1 }
 0x1fb   : > { %v669_v14 = vadd.f32 %v662_v13, %v592_v7  ;;  %v664_v15 = vpop.f32.mrb[9].mxu1 }
 0x1fc   : > { %v670_v16 = vadd.f32 %v664_v15, %v593_v10  ;;  %v666_v17 = vpop.f32.mrb[10].mxu1 }
 0x1fd   : > { %v667_v18 = vpop.f32.mrb[11].mxu1 }
 0x1fe   : > { %v739_v19 = vpop.f32.mrb[12].mxu0 }
 0x1ff   : > { %v746_v20 = vadd.f32 %v739_v19, %v669_v14  ;;  %v741_v21 = vpop.f32.mrb[13].mxu0 }
 0x200   : > { %v747_v22 = vadd.f32 %v741_v21, %v670_v16  ;;  %v743_v23 = vpop.f32.mrb[14].mxu0 }
 0x201   : > { %v744_v24 = vpop.f32.mrb[15].mxu0 }
 0x202   : > { %v793_v8 = vpop.f32.mrb[12].mxu1 }
 0x203   : > { %v800_v25 = vadd.f32 %v793_v8, %v746_v20  ;;  %v795_v6 = vpop.f32.mrb[13].mxu1 }
 0x204   : > { %v801_v26 = vadd.f32 %v795_v6, %v747_v22  ;;  %v797_v27 = vpop.f32.mrb[14].mxu1 }
 0x205   : > { %v798_v28 = vpop.f32.mrb[15].mxu1 }
 0x206   : > { %v869_v29 = vpop.f32.mrb[16].mxu0 }
 0x207   : > { %v876_v31 = vadd.f32 %v869_v29, %v800_v25  ;;  %v871_v33 = vpop.f32.mrb[17].mxu0 }
 0x208   : > { %v877_v34 = vadd.f32 %v871_v33, %v801_v26  ;;  %v873_v35 = vpop.f32.mrb[18].mxu0 }
 0x209   : > { %v884_v36 = vadd.f32 %v882_v30, %v876_v31  ;;  %v874_v37 = vpop.f32.mrb[19].mxu0 }
 0x20a   : > { %v885_v38 = vadd.f32 %v882_v30, %v877_v34 }
 0x20b   : > { %886 = vst [vmem:[%s163_s24] sm:$0xff] %v884_v36 }
 0x20c   : > { %887 = vst [vmem:[%s163_s24 + $0x8] sm:$0xff] %v885_v38 }
 0x20d   : > { %1065 = shalt.err (!%p1062_p3)
}
 0x20e   : > { %s1066_s6 = scalar_lea.hbm %s1388_s28, 256  ;;  %s1070_s9 = scalar_lea.hbm %s1433_s3, 512 }
 0x20f   : > { %p1067_p4 = scmp.ne.s32.totalorder %s1388_s28, %s1066_s6  ;;  %p1071_p9 = scmp.lt.u32.totalorder %s1388_s28, %s1433_s3 }
 0x210   : > { %p1072_p10 = scmp.lt.u32.totalorder %s1070_s9, %s1066_s6  ;;  %p1074_p12 = scmp.lt.u32.totalorder %s1066_s6, %s1388_s28 }
 0x211   : > { %p1068_p7 = pnand %p1067_p4, %p1184_p5 }
 0x212   : > { %p1073_p11 = por %p1072_p10, %p1071_p9 }
 0x213   : > { %p1069_p8 = pneg %p1068_p7 }
 0x214   : > { %p1075_p13 = por %p1074_p12, %p1073_p11 }
 0x216   : > { %p1076_p0 = pnand %p1075_p13, %p1069_p8 }
 0x218   : > { %1079 = shalt.err (!%p1076_p0)
}
 0x219   : > { %1003 = dma.vmem_to_hbm [thread:$0]  (%p1184_p5), %s1390_s25, 256, %s1388_s28, %s889_s16  }
 0x21a PF: > { %p1009_p1 = scmp.ge.s32.totalorder %s1114_s15, 2  ;;  %s915_s17 = sand.u32 1, %s1102_s12  }
 0x21b   : > { %s916_s19 = scalar_lea.sflag [#allocation3], %s915_s17 }
 0x21c   : > { %p1006_p2 = pnand %p1009_p1, %p1188_p6 }
 0x21e   : > { %1097 = dma.done.wait (!%p1006_p2), %s916_s19, 256  }
 0x21f   : > { %1099 = vsyncadd (!%p1006_p2), %s916_s19, 4294967040  ;;  %p13_p3 = scmp.ge.s32.totalorder %s1171_s18, 4   ;;  %s1436_s12 = smov %s1106_s13 }
 0x220   : > { %s1437_s13 = smov %s1110_s14  ;;  %s1438_s14 = smov %s1182_s21 }
 0x221   : > { %s1439_s15 = smov %s1171_s18  ;;  %15 = sbr.rel (!%p13_p3) target bundleno = 3 (0x3), region = 75 }
 0x228   :  { %921 = vsyncpa [#allocation3], 1 }
 0x229   :  { %923 = vsyncpa [#allocation3 + $0x1], 1 }

</bundles_post_ra>
